<compile_context>
chip_gen: v6e
topology: v6e:2x2x1
jax: 0.10.0
libtpu: 0.0.40
codegen_flags: <defaults>
</compile_context>

<pallas_src>
import jax
import jax.numpy as jnp
from jax.experimental import pallas as pl
from jax.experimental.pallas import tpu as pltpu

NEG_SLOPE = 0.01  # F.leaky_relu default negative_slope


def _round_up(x, m):
    return ((x + m - 1) // m) * m


# ----------------------------------------------------------------------------
# Pallas kernel: per-point MLP (folded conv+BN) + leaky_relu + max over nsample
# ----------------------------------------------------------------------------
def _make_sa_mlp_kernel(num_layers, tile_s, k_pad):
    def kernel(*refs):
        x_ref = refs[0]           # (tile_s*k_pad, c_in_pad)  bf16
        o_ref = refs[-1]          # (tile_s, c_out_pad)       f32
        wb = refs[1:-1]           # interleaved (W_i bf16, b_i f32)

        h = x_ref[...]            # bf16 enters the MXU directly
        for li in range(num_layers):
            w = wb[2 * li][...]                      # (c_prev_pad, c_next_pad) bf16
            b = wb[2 * li + 1][...]                  # (1, c_next_pad)          f32
            acc = jnp.dot(h, w, preferred_element_type=jnp.float32) + b
            act = jnp.maximum(acc, NEG_SLOPE * acc)  # leaky_relu (mul + max)
            h = act if li == num_layers - 1 else act.astype(jnp.bfloat16)

        c_out = h.shape[-1]
        # k_pad % 8 == 0 -> reshape is a free sublane regrouping; max -> XLU.
        o_ref[...] = jnp.max(h.reshape(tile_s, k_pad, c_out), axis=1).astype(o_ref.dtype)

    return kernel


def _choose_tile_s(S, k_pad, c_max_pad, budget_bytes=6 * 1024 * 1024):
    """Pick a centroid tile so the per-step working set (double-buffered bf16
    input + widest f32 intermediate + bf16 recast) stays well under the scoped
    VMEM default on v5e/v6e/v7x."""
    per_row_bytes = c_max_pad * 10 + 64
    rows = max(8 * k_pad, budget_bytes // per_row_bytes)
    cand = max(8, (rows // k_pad) // 8 * 8)
    cand = 1 << (cand.bit_length() - 1)   # floor to a power of two (>= 8)
    if cand >= S:
        return S                           # one tile covers all centroids
    return cand


def sa_mlp_pallas(grouped, weights, biases):
    """grouped: (B, S, K, C_in) f32; weights[i]: (C_i, C_{i+1}) f32 (BN folded);
    biases[i]: (1, C_{i+1}) f32.  Returns (B, S, C_out) f32."""
    B, S, K, C_in = grouped.shape
    num_layers = len(weights)
    C_out = weights[-1].shape[1]

    # ---- padded sizes -------------------------------------------------------
    c_in_pad = _round_up(C_in, 8)
    c_pads = [_round_up(w.shape[1], 128) for w in weights]   # lane-dense layers
    c_out_pad = c_pads[-1]
    k_pad = _round_up(K, 8)
    tile_s = _choose_tile_s(S, k_pad, max([c_in_pad] + c_pads))
    s_pad = S if tile_s == S else _round_up(S, tile_s)
    num_s_tiles = s_pad // tile_s
    tile_rows = tile_s * k_pad

    # ---- pad + cast operands ------------------------------------------------
    g = grouped
    if k_pad != K:   # duplicate edge neighbor: max over K is unaffected
        g = jnp.pad(g, ((0, 0), (0, 0), (0, k_pad - K), (0, 0)), mode="edge")
    if s_pad != S:   # padded centroid rows are garbage and sliced off below
        g = jnp.pad(g, ((0, 0), (0, s_pad - S), (0, 0), (0, 0)))
    if c_in_pad != C_in:
        g = jnp.pad(g, ((0, 0), (0, 0), (0, 0), (0, c_in_pad - C_in)))
    x_flat = g.reshape(B, s_pad * k_pad, c_in_pad).astype(jnp.bfloat16)

    ws, bs = [], []
    prev_pad = c_in_pad
    for w, b, cp in zip(weights, biases, c_pads):
        ws.append(jnp.pad(w, ((0, prev_pad - w.shape[0]),
                              (0, cp - w.shape[1]))).astype(jnp.bfloat16))
        bs.append(jnp.pad(b, ((0, 0), (0, cp - b.shape[1]))).astype(jnp.float32))
        prev_pad = cp

    # ---- pallas call --------------------------------------------------------
    in_specs = [pl.BlockSpec((None, tile_rows, c_in_pad), lambda b, s: (b, s, 0))]
    operands = [x_flat]
    for w, bia in zip(ws, bs):
        # constant index_map -> DMA'd into VMEM once, resident across the grid
        in_specs.append(pl.BlockSpec(w.shape, lambda b, s: (0, 0)))
        in_specs.append(pl.BlockSpec(bia.shape, lambda b, s: (0, 0)))
        operands.append(w)
        operands.append(bia)

    out = pl.pallas_call(
        _make_sa_mlp_kernel(num_layers, tile_s, k_pad),
        out_shape=jax.ShapeDtypeStruct((B, s_pad, c_out_pad), jnp.float32),
        grid_spec=pltpu.PrefetchScalarGridSpec(
            num_scalar_prefetch=0,
            grid=(B, num_s_tiles),
            in_specs=in_specs,
            out_specs=pl.BlockSpec((None, tile_s, c_out_pad), lambda b, s: (b, s, 0)),
        ),
        compiler_params=pltpu.CompilerParams(
            dimension_semantics=("parallel", "parallel")),
    )(*operands)

    return out[:, :S, :C_out]


# ----------------------------------------------------------------------------
# Glue: sampling / grouping (plain JAX, data-dependent gathers & top-k)
# ----------------------------------------------------------------------------
def farthest_point_sample(xyz, npoint, init_farthest):
    B, N, _ = xyz.shape

    def body(i, state):
        centroids, distance, farthest = state
        centroids = centroids.at[:, i].set(farthest)
        centroid = xyz[jnp.arange(B), farthest][:, None, :]       # (B, 1, 3)
        dist = jnp.sum((xyz - centroid) ** 2, axis=-1)            # (B, N)
        distance = jnp.minimum(distance, dist)
        farthest = jnp.argmax(distance, axis=-1).astype(jnp.int32)
        return centroids, distance, farthest

    centroids0 = jnp.zeros((B, npoint), jnp.int32)
    distance0 = jnp.full((B, N), 1e10, jnp.float32)
    centroids, _, _ = jax.lax.fori_loop(
        0, npoint, body, (centroids0, distance0, init_farthest.astype(jnp.int32)))
    return centroids


def index_points(points, idx):
    B = points.shape[0]
    batch = jnp.arange(B).reshape((B,) + (1,) * (idx.ndim - 1))
    return points[batch, idx]


def square_distance(src, dst):
    return jnp.sum((src[:, :, None, :] - dst[:, None, :, :]) ** 2, axis=-1)


def sample_and_group_knn(npoint, nsample, xyz, points, init_farthest):
    fps_idx = farthest_point_sample(xyz, npoint, init_farthest)     # (B, S)
    new_xyz = index_points(xyz, fps_idx)                            # (B, S, 3)
    dists = square_distance(new_xyz, xyz)                           # (B, S, N)
    _, idx = jax.lax.top_k(-dists, nsample)                         # k nearest (B, S, K)
    grouped_xyz = index_points(xyz, idx)                            # (B, S, K, 3)
    grouped_xyz_norm = grouped_xyz - new_xyz[:, :, None, :]
    if points is not None:
        grouped_points = index_points(points, idx)                  # (B, S, K, D)
        new_points = jnp.concatenate([grouped_xyz_norm, grouped_points], axis=-1)
    else:
        new_points = grouped_xyz_norm
    return new_xyz, new_points


def sample_and_group_all(xyz, points):
    B, N, C = xyz.shape
    new_xyz = jnp.zeros((B, 1, C), xyz.dtype)
    grouped = xyz[:, None, :, :]
    if points is not None:
        new_points = jnp.concatenate([grouped, points[:, None, :, :]], axis=-1)
    else:
        new_points = grouped
    return new_xyz, new_points


# ----------------------------------------------------------------------------
# Module wrapper with deterministic synthetic parameters (BN folded, eval mode)
# ----------------------------------------------------------------------------
class PointNetSetAbstractionPallas:
    def __init__(self, npoint, radius, nsample, in_channel, mlp, group_all,
                 knn=False, key=None):
        self.npoint = npoint
        self.radius = radius
        self.nsample = nsample
        self.group_all = group_all
        self.knn = knn
        if key is None:
            key = jax.random.PRNGKey(42)
        self.weights, self.biases = self._init_params(key, in_channel, mlp)

    @staticmethod
    def _init_params(key, in_channel, mlp):
        eps = 1e-5
        ws, bs = [], []
        last = in_channel
        for out_c in mlp:
            key, kw, kb, kg, kbe, km, kv = jax.random.split(key, 7)
            W = jax.random.normal(kw, (out_c, last), jnp.float32) / jnp.sqrt(float(last))
            b = 0.05 * jax.random.normal(kb, (out_c,), jnp.float32)
            gamma = 1.0 + 0.1 * jax.random.normal(kg, (out_c,), jnp.float32)
            beta = 0.1 * jax.random.normal(kbe, (out_c,), jnp.float32)
            r_mean = 0.1 * jax.random.normal(km, (out_c,), jnp.float32)
            r_var = 0.9 + 0.1 * jnp.abs(jax.random.normal(kv, (out_c,), jnp.float32))
            scale = gamma / jnp.sqrt(r_var + eps)
            W_eff = (W * scale[:, None]).T                      # (last, out_c)
            b_eff = ((b - r_mean) * scale + beta)[None, :]      # (1, out_c)
            ws.append(W_eff)
            bs.append(b_eff)
            last = out_c
        return ws, bs

    def group(self, xyz, points, key):
        if self.group_all:
            return sample_and_group_all(xyz, points)
        B, N, _ = xyz.shape
        init_far = jax.random.randint(key, (B,), 0, N, dtype=jnp.int32)
        if self.knn:
            return sample_and_group_knn(self.npoint, self.nsample, xyz, points, init_far)
        raise NotImplementedError("query_ball_point grouping not available (see TODO).")

    def __call__(self, xyz, points, key):
        new_xyz, new_points = self.group(xyz, points, key)           # (B,S,3), (B,S,K,3+D)
        feat = sa_mlp_pallas(new_points, self.weights, self.biases)  # (B, S, mlp[-1])
        return new_xyz, feat


# ----------------------------------------------------------------------------
# Pure-JAX reference of the MLP hot path (mirrors kernel numerics: bf16 matmul
# inputs, f32 accumulation).
# ----------------------------------------------------------------------------
def _reference_mlp(grouped, weights, biases):
    h = grouped.astype(jnp.float32)
    for w, b in zip(weights, biases):
        h = jnp.einsum("bskc,cd->bskd", h.astype(jnp.bfloat16), w.astype(jnp.bfloat16),
                       preferred_element_type=jnp.float32) + b
        h = jnp.maximum(h, NEG_SLOPE * h)
    return jnp.max(h, axis=2)                                        # (B, S, C_out)


# ----------------------------------------------------------------------------
if __name__ == "__main__":
    key = jax.random.PRNGKey(0)
    k_xyz, k_pts, k_init, k_params = jax.random.split(key, 4)

    B, N, D = 2, 32, 4          # batch, points, extra feature channels
    npoint, nsample = 8, 8
    mlp = [16, 32]

    xyz = jax.random.normal(k_xyz, (B, N, 3), dtype=jnp.float32)
    points = jax.random.normal(k_pts, (B, N, D), dtype=jnp.float32)

    # --- config 1: knn grouping, K a multiple of 8 ---------------------------
    sa = PointNetSetAbstractionPallas(
        npoint=npoint, radius=0.4, nsample=nsample,
        in_channel=3 + D, mlp=mlp, group_all=False, knn=True, key=k_params)

    new_xyz, new_feat = sa(xyz, points, k_init)
    jax.block_until_ready((new_xyz, new_feat))
    assert new_xyz.shape == (B, npoint, 3)
    assert new_feat.shape == (B, npoint, mlp[-1])

    _, grouped = sa.group(xyz, points, k_init)
    ref = _reference_mlp(grouped, sa.weights, sa.biases)
    assert jnp.allclose(new_feat, ref, atol=2e-3, rtol=2e-3), "kernel mismatch vs reference"

    # --- config 2: nsample not a multiple of 8 exercises the K edge-pad path -
    sa2 = PointNetSetAbstractionPallas(
        npoint=npoint, radius=0.4, nsample=5,
        in_channel=3 + D, mlp=mlp, group_all=False, knn=True, key=k_params)
    _, feat2 = sa2(xyz, points, k_init)
    jax.block_until_ready(feat2)
    _, grouped2 = sa2.group(xyz, points, k_init)
    ref2 = _reference_mlp(grouped2, sa2.weights, sa2.biases)
    assert feat2.shape == (B, npoint, mlp[-1])
    assert jnp.allclose(feat2, ref2, atol=2e-3, rtol=2e-3), "kernel mismatch (K-padding path)"

    # --- config 3: group_all path (S = 1, K = N) ------------------------------
    sa3 = PointNetSetAbstractionPallas(
        npoint=None, radius=None, nsample=None,
        in_channel=3 + D, mlp=mlp, group_all=True, knn=False, key=k_params)
    xyz3, feat3 = sa3(xyz, points, k_init)
    jax.block_until_ready(feat3)
    _, grouped3 = sa3.group(xyz, points, k_init)
    ref3 = _reference_mlp(grouped3, sa3.weights, sa3.biases)
    assert feat3.shape == (B, 1, mlp[-1])
    assert jnp.allclose(feat3, ref3, atol=2e-3, rtol=2e-3), "kernel mismatch (group_all path)"

    print("KERNEL_OK")
</pallas_src>

<mosaic_0001>
module attributes {stable_mosaic.version = 11 : i64} {
  func.func @kernel(%arg0: i32, %arg1: i32, %arg2: memref<1x64x8xbf16, #tpu.memory_space<vmem>>, %arg3: memref<8x128xbf16, #tpu.memory_space<vmem>>, %arg4: memref<1x128xf32, #tpu.memory_space<vmem>>, %arg5: memref<128x128xbf16, #tpu.memory_space<vmem>>, %arg6: memref<1x128xf32, #tpu.memory_space<vmem>>, %arg7: memref<1x8x128xf32, #tpu.memory_space<vmem>>) attributes {dimension_semantics = [#tpu.dimension_semantics<parallel>, #tpu.dimension_semantics<parallel>], iteration_bounds = array<i64: 2, 1>, scalar_prefetch = 0 : i64, scratch_operands = 0 : i64, tpu.core_type = #tpu.core_type<tc>, window_params = [{transform_indices = @transform_0, window_bounds = array<i64: 1, 64, 8>}, {pipeline_mode = #tpu.pipeline_mode<synchronous>, transform_indices = @transform_1, window_bounds = array<i64: 8, 128>}, {pipeline_mode = #tpu.pipeline_mode<synchronous>, transform_indices = @transform_2, window_bounds = array<i64: 1, 128>}, {pipeline_mode = #tpu.pipeline_mode<synchronous>, transform_indices = @transform_3, window_bounds = array<i64: 128, 128>}, {pipeline_mode = #tpu.pipeline_mode<synchronous>, transform_indices = @transform_4, window_bounds = array<i64: 1, 128>}, {transform_indices = @transform_5, window_bounds = array<i64: 1, 8, 128>}]} {
    %c0 = arith.constant 0 : index
    %c0_0 = arith.constant 0 : index
    %c0_1 = arith.constant 0 : index
    %0 = vector.load %arg2[%c0, %c0_0, %c0_1] : memref<1x64x8xbf16, #tpu.memory_space<vmem>>, vector<1x64x8xbf16>
    %1 = vector.shape_cast %0 : vector<1x64x8xbf16> to vector<64x8xbf16>
    %c0_2 = arith.constant 0 : index
    %c0_3 = arith.constant 0 : index
    %2 = vector.load %arg3[%c0_2, %c0_3] : memref<8x128xbf16, #tpu.memory_space<vmem>>, vector<8x128xbf16>
    %c0_4 = arith.constant 0 : index
    %c0_5 = arith.constant 0 : index
    %3 = vector.load %arg4[%c0_4, %c0_5] : memref<1x128xf32, #tpu.memory_space<vmem>>, vector<1x128xf32>
    %cst = arith.constant dense<0.000000e+00> : vector<64x128xf32>
    %4 = tpu.matmul %1, %2, %cst {dimension_numbers = #tpu.dot_dimension_numbers<[1], [0], [0], [1], [0, 0, 1, 1], [], []>} : vector<64x8xbf16>, vector<8x128xbf16>, vector<64x128xf32> -> vector<64x128xf32>
    %5 = vector.broadcast %3 : vector<1x128xf32> to vector<64x128xf32>
    %6 = arith.addf %4, %5 : vector<64x128xf32>
    %cst_6 = arith.constant 0.00999999977 : f32
    %7 = vector.broadcast %cst_6 : f32 to vector<64x128xf32>
    %8 = arith.mulf %7, %6 : vector<64x128xf32>
    %9 = arith.maximumf %6, %8 : vector<64x128xf32>
    %10 = arith.truncf %9 : vector<64x128xf32> to vector<64x128xbf16>
    %c0_7 = arith.constant 0 : index
    %c0_8 = arith.constant 0 : index
    %11 = vector.load %arg5[%c0_7, %c0_8] : memref<128x128xbf16, #tpu.memory_space<vmem>>, vector<128x128xbf16>
    %c0_9 = arith.constant 0 : index
    %c0_10 = arith.constant 0 : index
    %12 = vector.load %arg6[%c0_9, %c0_10] : memref<1x128xf32, #tpu.memory_space<vmem>>, vector<1x128xf32>
    %cst_11 = arith.constant dense<0.000000e+00> : vector<64x128xf32>
    %13 = tpu.matmul %10, %11, %cst_11 {dimension_numbers = #tpu.dot_dimension_numbers<[1], [0], [0], [1], [0, 0, 1, 1], [], []>} : vector<64x128xbf16>, vector<128x128xbf16>, vector<64x128xf32> -> vector<64x128xf32>
    %14 = vector.broadcast %12 : vector<1x128xf32> to vector<64x128xf32>
    %15 = arith.addf %13, %14 : vector<64x128xf32>
    %cst_12 = arith.constant 0.00999999977 : f32
    %16 = vector.broadcast %cst_12 : f32 to vector<64x128xf32>
    %17 = arith.mulf %16, %15 : vector<64x128xf32>
    %18 = arith.maximumf %15, %17 : vector<64x128xf32>
    %19 = vector.shape_cast %18 : vector<64x128xf32> to vector<8x8x128xf32>
    %cst_13 = arith.constant dense<0xFF800000> : vector<8x128xf32>
    %20 = vector.multi_reduction <maximumf>, %19, %cst_13 [1] : vector<8x8x128xf32> to vector<8x128xf32>
    %c0_14 = arith.constant 0 : index
    %c0_15 = arith.constant 0 : index
    %c0_16 = arith.constant 0 : index
    %21 = vector.load %arg7[%c0_14, %c0_15, %c0_16] : memref<1x8x128xf32, #tpu.memory_space<vmem>>, vector<1x8x128xf32>
    %22 = vector.shape_cast %21 : vector<1x8x128xf32> to vector<8x128xf32>
    %23 = vector.shape_cast %20 : vector<8x128xf32> to vector<1x8x128xf32>
    tpu.vector_store %arg7[%c0_14, %c0_15, %c0_16], %23 {strides = array<i32>} : memref<1x8x128xf32, #tpu.memory_space<vmem>>, vector<1x8x128xf32>,
    return
  }
  func.func @transform_0(%arg0: i32, %arg1: i32) -> (i32, i32, i32) {
    %c0_i32 = arith.constant 0 : i32
    %c0_i32_0 = arith.constant 0 : i32
    return %arg0, %arg1, %c0_i32 : i32, i32, i32
  }
  func.func @transform_1(%arg0: i32, %arg1: i32) -> (i32, i32) {
    %c0_i32 = arith.constant 0 : i32
    %c0_i32_0 = arith.constant 0 : i32
    %c0_i32_1 = arith.constant 0 : i32
    return %c0_i32, %c0_i32_0 : i32, i32
  }
  func.func @transform_2(%arg0: i32, %arg1: i32) -> (i32, i32) {
    %c0_i32 = arith.constant 0 : i32
    %c0_i32_0 = arith.constant 0 : i32
    %c0_i32_1 = arith.constant 0 : i32
    return %c0_i32, %c0_i32_0 : i32, i32
  }
  func.func @transform_3(%arg0: i32, %arg1: i32) -> (i32, i32) {
    %c0_i32 = arith.constant 0 : i32
    %c0_i32_0 = arith.constant 0 : i32
    %c0_i32_1 = arith.constant 0 : i32
    return %c0_i32, %c0_i32_0 : i32, i32
  }
  func.func @transform_4(%arg0: i32, %arg1: i32) -> (i32, i32) {
    %c0_i32 = arith.constant 0 : i32
    %c0_i32_0 = arith.constant 0 : i32
    %c0_i32_1 = arith.constant 0 : i32
    return %c0_i32, %c0_i32_0 : i32, i32
  }
  func.func @transform_5(%arg0: i32, %arg1: i32) -> (i32, i32, i32) {
    %c0_i32 = arith.constant 0 : i32
    %c0_i32_0 = arith.constant 0 : i32
    return %arg0, %arg1, %c0_i32 : i32, i32, i32
  }
}

</mosaic_0001>

<bundles_post_ra>
// kernel: tpu_custom_call.1
= control target key start
LH: loop header
LB: loop body
LE: loop exit
PB: predicated region body
PF: predicated region fallthrough
CT: control target
= control target key end

     0   :  { %10 = vsyncpa [#allocation3], 0  ;;  %s1126_s0 = inlined_call_operand.vmem [shape: bf16[2,64,8], index: 0, kind: input, shape index: {}]   ;;  %s1127_s1 = inlined_call_operand.vmem [shape: bf16[8,128], index: 1, kind: input, shape index: {}]   ;;  %s1128_s2 = inlined_call_operand.vmem [shape: f32[1,128], index: 2, kind: input, shape index: {}]   ;;  %s1129_s3 = inlined_call_operand.vmem [shape: bf16[128,128], index: 3, kind: input, shape index: {}]   ;;  %s1130_s4 = inlined_call_operand.vmem [shape: f32[1,128], index: 4, kind: input, shape index: {}]   ;;  %s1131_s5 = inlined_call_operand.hbm [shape: f32[2,8,128], index: 5, kind: output, shape index: {}]  }
   0x1   :  { %12 = vsyncpa [#allocation3 + $0x1], 0  ;;  %s980_s18 = smov 0   ;;  %s982_s19 = smov 0  }
   0x2   :  { %s984_s20 = smov 0   ;;  %s986_s21 = smov 0  }
   0x3   :  { %s988_s22 = smov 0   ;;  %s990_s23 = smov 0  }
   0x4 LB: > { %s705_s24 = sadd.s32 4294967295, %s947_s23   ;;  %s706_s25 = sadd.s32 4294967294, %s947_s23   ;;  %s947_s23 = sphi %s990_s23, %s18_s23   ;;  %s943_s22 = sphi %s988_s22, %s1138_s22   ;;  %s939_s21 = sphi %s986_s21, %s1137_s21   ;;  %s935_s20 = sphi %s984_s20, %s1136_s20   ;;  %s931_s19 = sphi %s982_s19, %s1135_s19   ;;  %s927_s18 = sphi %s980_s18, %s1134_s18  }
   0x5   : > { %s30_s26 = sadd.s32 1, %s943_s22  ;;  %s151_s27 = sadd.s32 1, %s935_s20 }
   0x6   : > { %p32_p0 = scmp.ge.s32.totalorder %s30_s26, 2  ;;  %p161_p1 = scmp.ne.s32.totalorder %s935_s20, %s931_s19 }
   0x7   : > { %p162_p2 = scmp.eq.s32.totalorder %s705_s24, 1  ;;  %p167_p3 = scmp.ne.s32.totalorder %s931_s19, %s927_s18 }
   0x8   : > { %s1140_s26 = smov (%p32_p0, %s30_s26), 0  ;;  %p168_p5 = scmp.eq.s32.totalorder %s706_s25, 1 }
   0x9   : > { %p1020_p4 = por %p162_p2, %p161_p1  ;;  %s146_s29 = ssub.s32 %s943_s22, %s1140_s26 }
   0xa   : > { %p709_p6 = scmp.ge.s32.totalorder %s947_s23, 1  ;;  %p149_p7 = scmp.eq.s32.totalorder %s146_s29, 0 }
   0xb   : > { %p1027_p8 = por %p168_p5, %p167_p3  ;;  %p211_p9 = scmp.lt.s32.totalorder %s947_s23, 3 }
   0xc   : > { %s1033_s6 = scalar_select %p149_p7, %s935_s20, %s151_s27  }
   0xd   : > { %p212_p10 = pnand %p709_p6, %p211_p9 }
   0xe   : > { %p244_p11 = scmp.lt.s32.totalorder (!%p212_p10), %s939_s21, 1  ;;  %s732_s29 = sshll.u32 (!%p212_p10), %s939_s21, 7 }
   0xf   : > { %215 = sbr.rel (%p212_p10) target bundleno = 475 (0x1db), region = 40  ;;  %s949_s13 = smov (!%p212_p10), [#allocation2]  }
  0x14   : > { %v262_v0 = vld [vmem:[%s1127_s1] sm:$0xf]  ;;  %vm303_vm0 = vcmask 1043456   ;;  %v863_v1 = vld [vmem:[%s1129_s3 + $0x38] sm:$0xff]   ;;  %vm290_vm1 = vcmask 64512   ;;  %s245_s11 = scalar_select %p244_p11, %s939_s21, 1 }
  0x15   : > { %803 = vmatprep.subr.msk.bf16.mxu0 %vm303_vm0, %v262_v0  ;;  %v305_v2 = vsel %vm303_vm0, %v262_v0, 0  ;;  %v864_v3 = vld [vmem:[%s1129_s3 + $0x30] sm:$0xff]   ;;  %787 = vmatprep.subr.bf16.mxu1 %v863_v1  ;;  %v865_v4 = vld [vmem:[%s1129_s3 + $0x28] sm:$0xff]   ;;  %v866_v8 = vld [vmem:[%s1129_s3 + $0x20] sm:$0xff]   ;;  %vm600_vm2 = vcmask 1041409   ;;  %vm602_vm3 = vcmask 1042434  }
  0x16   : > { %754 = vmatpush3.bf16.msra.mxu0 %v305_v2  ;;  %795 = vmatpush3.bf16.msra.mxu1 %v863_v1  ;;  %s735_s14 = sshll.u32 %s245_s11, 5  ;;  %v867_v10 = vld [vmem:[%s1129_s3 + $0x18] sm:$0xff]   ;;  %v868_v11 = vld [vmem:[%s1129_s3 + $0x10] sm:$0xff]   ;;  %v869_v12 = vld [vmem:[%s1129_s3 + $0x8] sm:$0xff]   ;;  %vm604_vm4 = vcmask 1043459   ;;  %vm606_vm5 = vcmask 1044484   ;;  %s1084_s11 = scalar_lea.hbm %s1131_s5, %s732_s29 }
  0x17   : > { %763 = vmatprep.subr.bf16.mxu0 %v863_v1  ;;  %788 = vmatprep.subr.bf16.mxu1 %v864_v3  ;;  %s251_s25 = scalar_lea.vmem %s1126_s0, %s735_s14  ;;  %v870_v13 = vld [vmem:[%s1129_s3] sm:$0xff]   ;;  %vm608_vm6 = vcmask 1045509   ;;  %vm610_vm7 = vcmask 1046534   ;;  %vm612_vm8 = vcmask 1047559   ;;  %s875_s14 = sshll.u32 %s949_s13, 4  ;;  %s876_s14 = int_to_ptr.vmem [resolvable:$false] %s875_s14 }
  0x18   : > { %v859_v5 = vld [vmem:[%s251_s25] sm:$0xff]   ;;  %v860_v6 = vld [vmem:[%s251_s25 + $0x8] sm:$0xff]   ;;  %v861_v7 = vld [vmem:[%s251_s25 + $0x10] sm:$0xff]   ;;  %s877_s15 = scalar_lea.vmem %s876_s14, 256 }
  0x19   : > { %755 = vmatprep.mubr.msk.bf16.mxu0 %vm290_vm1, %v859_v5  ;;  %v862_v9 = vld [vmem:[%s251_s25 + $0x18] sm:$0xff]   ;;  %v713_v15 = vld [vmem:[%s1128_s2] ss:$0 sm:$0xff]  ;;  %s240_s25 = sand.u32 1, %s931_s19  }
  0x1a   : > { %796 = vmatpush3.bf16.msra.mxu1 %v864_v3  ;;  %756 = vmatmul.mubr.msk.bf16.vlgmr.msra.gmra.mxu0 %vm290_vm1, %v860_v6  ;;  %v722_v51 = vld [vmem:[%s1130_s4] ss:$0 sm:$0xff]  ;;  %s710_s27 = sshll.u32 %s240_s25, 3  ;;  %s617_s12 = scalar_lea.sflag [#allocation3], %s240_s25 }
  0x1b   : > { %789 = vmatprep.subr.bf16.mxu1 %v865_v4  ;;  %759 = vmatprep.mubr.msk.bf16.mxu0 %vm290_vm1, %v861_v7  ;;  %s242_s7 = scalar_lea.vmem [#allocation2], %s710_s27 }
  0x1c   : > { %764 = vmatpush3.bf16.msra.mxu0 %v863_v1  ;;  %s631_s8 = sshll.u32 %s242_s7, 4  ;;  %s632_s8 = int_to_ptr.vmem [resolvable:$true] %s631_s8 }
  0x1d   : > { %765 = vmatprep.subr.bf16.mxu0 %v864_v3  ;;  %s871_s21 = scalar_lea.vmem %s632_s8, 128  ;;  %p878_p1 = scmp.lt.s32.totalorder %s632_s8, %s876_s14 }
  0x1e   : > { %797 = vmatpush3.bf16.msra.mxu1 %v865_v4  ;;  %p872_p12 = scmp.ne.s32.totalorder %s632_s8, %s871_s21  ;;  %p879_p2 = scmp.lt.s32.totalorder %s877_s15, %s871_s21 }
  0x1f   : > { %790 = vmatprep.subr.bf16.mxu1 %v866_v8 }
  0x20   : > { %766 = vmatpush3.bf16.msra.mxu0 %v864_v3  ;;  %p873_p13 = pnand %p872_p12, %p1020_p4  ;;  %p880_p3 = por %p879_p2, %p878_p1 }
  0x21   : > { %767 = vmatprep.subr.bf16.mxu0 %v865_v4 }
  0x22   : > { %798 = vmatpush3.bf16.msra.mxu1 %v866_v8  ;;  %760 = vmatmul.mubr.msk.bf16.gmra.mxu0 %vm290_vm1, %v862_v9  ;;  %p874_p0 = pneg %p873_p13 }
  0x23   : > { %791 = vmatprep.subr.bf16.mxu1 %v867_v10 }
  0x24   : > { %768 = vmatpush3.bf16.msra.mxu0 %v865_v4  ;;  %p881_p5 = pnand %p880_p3, %p874_p0 }
  0x25   : > { %769 = vmatprep.subr.bf16.mxu0 %v866_v8 }
  0x26   : > { %799 = vmatpush3.bf16.msra.mxu1 %v867_v10 }
  0x27   : > { %792 = vmatprep.subr.bf16.mxu1 %v868_v11 }
  0x28   : > { %770 = vmatpush3.bf16.msra.mxu0 %v866_v8 }
  0x29   : > { %771 = vmatprep.subr.bf16.mxu0 %v867_v10 }
  0x2a   : > { %800 = vmatpush3.bf16.msra.mxu1 %v868_v11 }
  0x2b   : > { %793 = vmatprep.subr.bf16.mxu1 %v869_v12 }
  0x2c   : > { %772 = vmatpush3.bf16.msra.mxu0 %v867_v10 }
  0x2d   : > { %773 = vmatprep.subr.bf16.mxu0 %v868_v11 }
  0x2e   : > { %801 = vmatpush3.bf16.msra.mxu1 %v869_v12 }
  0x2f   : > { %794 = vmatprep.subr.bf16.mxu1 %v870_v13 }
  0x30   : > { %774 = vmatpush3.bf16.msra.mxu0 %v868_v11 }
  0x31   : > { %775 = vmatprep.subr.bf16.mxu0 %v869_v12 }
  0x32   : > { %802 = vmatpush3.bf16.msra.mxu1 %v870_v13 }
  0x34   : > { %776 = vmatpush3.bf16.msra.mxu0 %v869_v12 }
  0x35   : > { %777 = vmatprep.subr.bf16.mxu0 %v870_v13 }
  0x38   : > { %778 = vmatpush3.bf16.msra.mxu0 %v870_v13 }
  0xda   : > { %v757_v14 = vpop.f32.mrf.mxu0 }
  0xdb   : > { %v350_v18 = vadd.f32 %v757_v14, %v713_v15 }
  0xdc   : > { %v341_v16 = vpop.f32.mrf.mxu0 }
  0xdd   : > { %v342_v17 = vadd.f32 %v713_v15, %v341_v16  ;;  %v374_v25 = vmul.f32 0.01, %v350_v18 }
  0xde   : > { %v758_v19 = vpop.f32.mrf.mxu0 }
  0xdf   : > { %v353_v20 = vadd.f32 %v758_v19, %v713_v15  ;;  %v372_v22 = vmul.f32 0.01, %v342_v17  ;;  %v382_v33 = vmax.f32 %v350_v18, %v374_v25 }
  0xe0   : > { %v344_v21 = vpop.f32.mrf.mxu0 }
  0xe1   : > { %v375_v23 = vmul.f32 0.01, %v353_v20  ;;  %v345_v24 = vadd.f32 %v713_v15, %v344_v21  ;;  %v380_v30 = vmax.f32 %v342_v17, %v372_v22 }
  0xe2   : > { %v761_v26 = vpop.f32.mrf.mxu0 }
  0xe3   : > { %v373_v27 = vmul.f32 0.01, %v345_v24  ;;  %v383_v28 = vmax.f32 %v353_v20, %v375_v23  ;;  %v366_v34 = vadd.f32 %v761_v26, %v713_v15 }
  0xe4   : > { %v357_v29 = vpop.f32.mrf.mxu0 }
  0xe5   : > { %v381_v31 = vmax.f32 %v345_v24, %v373_v27  ;;  %v358_v32 = vadd.f32 %v713_v15, %v357_v29  ;;  %v389_v38 = vpack.c.bf16 %v383_v28, %v382_v33  ;;  %v378_v43 = vmul.f32 0.01, %v366_v34 }
  0xe6   : > { %v762_v35 = vpop.f32.mrf.mxu0 }
  0xe7   : > { %v369_v36 = vadd.f32 %v762_v35, %v713_v15  ;;  %v388_v37 = vpack.c.bf16 %v381_v31, %v380_v30  ;;  %v376_v40 = vmul.f32 0.01, %v358_v32  ;;  %v386_v48 = vmax.f32 %v366_v34, %v378_v43 }
  0xe8   : > { %v360_v39 = vpop.f32.mrf.mxu0 }
  0xe9   : > { %v379_v41 = vmul.f32 0.01, %v369_v36  ;;  %v361_v42 = vadd.f32 %v713_v15, %v360_v39  ;;  %779 = vmatprep.mubr.bf16.mxu0 %v388_v37  ;;  %v384_v46 = vmax.f32 %v358_v32, %v376_v40 }
  0xea   : > { %780 = vmatmul.mubr.bf16.vlgmr.msra.gmra.mxu0 %v389_v38 }
  0xeb   : > { %v377_v44 = vmul.f32 0.01, %v361_v42  ;;  %v387_v45 = vmax.f32 %v369_v36, %v379_v41 }
  0xed   : > { %v385_v47 = vmax.f32 %v361_v42, %v377_v44  ;;  %v391_v50 = vpack.c.bf16 %v387_v45, %v386_v48 }
  0xef   : > { %v390_v49 = vpack.c.bf16 %v385_v47, %v384_v46 }
  0xf1   : > { %783 = vmatprep.mubr.bf16.mxu1 %v390_v49 }
  0xf2   : > { %784 = vmatmul.mubr.bf16.vlgmr.msra.gmra.mxu1 %v391_v50 }
 0x1aa   : > { %v781_v52 = vpop.f32.mrf.mxu0 }
 0x1ab   : > { %v506_v53 = vadd.f32 %v781_v52, %v722_v51 }
 0x1ac   : > { %v497_v54 = vpop.f32.mrf.mxu0 }
 0x1ad   : > { %v530_v55 = vmul.f32 0.01, %v506_v53  ;;  %v498_v56 = vadd.f32 %v722_v51, %v497_v54 }
 0x1ae   : > { %v782_v57 = vpop.f32.mrf.mxu0 }
 0x1af   : > { %v538_v58 = vmax.f32 %v506_v53, %v530_v55  ;;  %v528_v59 = vmul.f32 0.01, %v498_v56  ;;  %v509_v60 = vadd.f32 %v782_v57, %v722_v51 }
 0x1b0   : > { %v500_v61 = vpop.f32.mrf.mxu0 }
 0x1b1   : > { %v556_v62 = vrot.slane %v538_v58, 4  ;;  %v536_v63 = vmax.f32 %v498_v56, %v528_v59  ;;  %v531_v0 = vmul.f32 0.01, %v509_v60  ;;  %v501_v1 = vadd.f32 %v722_v51, %v500_v61 }
 0x1b2   : > { %v785_v2 = vpop.f32.mrf.mxu1 }
 0x1b3   : > { %v557_v3 = vmax.f32 %v538_v58, %v556_v62  ;;  %v544_v4 = vrot.slane %v536_v63, 4  ;;  %v539_v5 = vmax.f32 %v509_v60, %v531_v0  ;;  %v529_v6 = vmul.f32 0.01, %v501_v1 }
 0x1b4   : > { %v522_v7 = vadd.f32 %v785_v2, %v722_v51  ;;  %v513_v8 = vpop.f32.mrf.mxu1 }
 0x1b5   : > { %v545_v9 = vmax.f32 %v536_v63, %v544_v4  ;;  %v562_v10 = vrot.slane %v539_v5, 4  ;;  %v537_v11 = vmax.f32 %v501_v1, %v529_v6  ;;  %v514_v13 = vadd.f32 %v722_v51, %v513_v8 }
 0x1b6   : > { %v534_v12 = vmul.f32 0.01, %v522_v7  ;;  %v786_v14 = vpop.f32.mrf.mxu1  ;;  %v558_v15 = vrot.slane %v557_v3, 2 }
 0x1b7   : > { %v546_v16 = vrot.slane %v545_v9, 2  ;;  %v563_v17 = vmax.f32 %v539_v5, %v562_v10  ;;  %v550_v18 = vrot.slane %v537_v11, 4  ;;  %v532_v20 = vmul.f32 0.01, %v514_v13 }
 0x1b8   : > { %v542_v19 = vmax.f32 %v522_v7, %v534_v12  ;;  %v525_v21 = vadd.f32 %v786_v14, %v722_v51  ;;  %v516_v22 = vpop.f32.mrf.mxu1  ;;  %v559_v29 = vmax.f32 %v557_v3, %v558_v15 }
 0x1b9   : > { %v547_v23 = vmax.f32 %v545_v9, %v546_v16  ;;  %v551_v24 = vmax.f32 %v537_v11, %v550_v18  ;;  %v540_v26 = vmax.f32 %v514_v13, %v532_v20  ;;  %v517_v28 = vadd.f32 %v722_v51, %v516_v22 }
 0x1ba   : > { %v580_v25 = vrot.slane %v542_v19, 4  ;;  %v535_v27 = vmul.f32 0.01, %v525_v21  ;;  %v564_v30 = vrot.slane %v563_v17, 2  ;;  %v560_v41 = vrot.slane %v559_v29, 1 }
 0x1bb   : > { %v552_v31 = vrot.slane %v551_v24, 2  ;;  %v568_v33 = vrot.slane %v540_v26, 4  ;;  %v533_v35 = vmul.f32 0.01, %v517_v28  ;;  %v548_v36 = vrot.slane %v547_v23, 1 }
 0x1bc   : > { %v581_v32 = vmax.f32 %v542_v19, %v580_v25  ;;  %v543_v34 = vmax.f32 %v525_v21, %v535_v27  ;;  %v565_v42 = vmax.f32 %v563_v17, %v564_v30  ;;  %v561_v55 = vmax.f32 %v559_v29, %v560_v41 }
 0x1bd   : > { %v553_v37 = vmax.f32 %v551_v24, %v552_v31  ;;  %v569_v38 = vmax.f32 %v540_v26, %v568_v33  ;;  %v541_v40 = vmax.f32 %v517_v28, %v533_v35  ;;  %v549_v48 = vmax.f32 %v547_v23, %v548_v36 }
 0x1be   : > { %v586_v39 = vrot.slane %v543_v34, 4  ;;  %v582_v44 = vrot.slane %v581_v32, 2  ;;  %v566_v53 = vrot.slane %v565_v42, 1 }
 0x1bf   : > { %v554_v43 = vrot.slane %v553_v37, 1  ;;  %v570_v45 = vrot.slane %v569_v38, 2  ;;  %v574_v47 = vrot.slane %v541_v40, 4 }
 0x1c0   : > { %v587_v46 = vmax.f32 %v543_v34, %v586_v39  ;;  %v583_v56 = vmax.f32 %v581_v32, %v582_v44  ;;  %v567_v61 = vmax.f32 %v565_v42, %v566_v53 }
 0x1c1   : > { %v555_v49 = vmax.f32 %v553_v37, %v554_v43  ;;  %v571_v50 = vmax.f32 %v569_v38, %v570_v45  ;;  %v575_v52 = vmax.f32 %v541_v40, %v574_v47 }
 0x1c2   : > { %v588_v51 = vrot.slane %v587_v46, 2  ;;  %v584_v63 = vrot.slane %v583_v56, 1 }
 0x1c3   : > { %v601_v54 = vsel %vm600_vm2, %v555_v49, %v549_v48  ;;  %v572_v57 = vrot.slane %v571_v50, 1  ;;  %v576_v59 = vrot.slane %v575_v52, 2 }
 0x1c4   : > { %v589_v58 = vmax.f32 %v587_v46, %v588_v51  ;;  %v603_v60 = vsel %vm602_vm3, %v561_v55, %v601_v54  ;;  %v585_v5 = vmax.f32 %v583_v56, %v584_v63 }
 0x1c5   : > { %v577_v62 = vmax.f32 %v575_v52, %v576_v59  ;;  %v573_v0 = vmax.f32 %v571_v50, %v572_v57  ;;  %v605_v3 = vsel %vm604_vm4, %v567_v61, %v603_v60 }
 0x1c6   : > { %v590_v1 = vrot.slane %v589_v58, 1 }
 0x1c7   : > { %v578_v2 = vrot.slane %v577_v62, 1  ;;  %v607_v6 = vsel %vm606_vm5, %v573_v0, %v605_v3 }
 0x1c8   : > { %v591_v7 = vmax.f32 %v589_v58, %v590_v1 }
 0x1c9   : > { %v579_v4 = vmax.f32 %v577_v62, %v578_v2 }
 0x1cb   : > { %v609_v8 = vsel %vm608_vm6, %v579_v4, %v607_v6 }
 0x1cc   : > { %v611_v9 = vsel %vm610_vm7, %v585_v5, %v609_v8 }
 0x1cd   : > { %v613_v10 = vsel %vm612_vm8, %v591_v7, %v611_v9 }
 0x1ce   : > { %615 = vst [vmem:[%s242_s7] sm:$0xff] %v613_v10 }
 0x1cf   : > { %884 = shalt.err (!%p881_p5)
}
 0x1d0   : > { %s885_s16 = scalar_lea.hbm %s1084_s11, 128  ;;  %s889_s25 = scalar_lea.hbm %s1131_s5, 256 }
 0x1d1   : > { %p886_p6 = scmp.ne.s32.totalorder %s1084_s11, %s885_s16  ;;  %p890_p10 = scmp.lt.s32.totalorder %s1084_s11, %s1131_s5 }
 0x1d2   : > { %p891_p11 = scmp.lt.s32.totalorder %s889_s25, %s885_s16 }
 0x1d3   : > { %p887_p7 = pnand %p886_p6, %p1020_p4 }
 0x1d4   : > { %p892_p12 = por %p891_p11, %p890_p10 }
 0x1d5   : > { %p888_p9 = pneg %p887_p7 }
 0x1d7   : > { %p893_p13 = pnand %p892_p12, %p888_p9 }
 0x1d9   : > { %896 = shalt.err (!%p893_p13)
}
 0x1da   : > { %804 = dma.vmem_to_hbm [thread:$0]  (%p1020_p4), %s632_s8, 128, %s1084_s11, %s617_s12  }
 0x1db PF: > { %p810_p0 = scmp.ge.s32.totalorder %s947_s23, 2  ;;  %s643_s7 = sand.u32 1, %s927_s18  }
 0x1dc   : > { %s644_s9 = scalar_lea.sflag [#allocation3], %s643_s7 }
 0x1dd   : > { %p807_p1 = pnand %p810_p0, %p1027_p8 }
 0x1df   : > { %p808_p2 = pneg %p807_p1 }
 0x1e1   : > { %922 = dma.done.wait (%p808_p2), %s644_s9, 128  }
 0x1e2   : > { %924 = vsyncadd (%p808_p2), %s644_s9, 4294967168  ;;  %s18_s23 = sadd.s32 1, %s947_s23   ;;  %s1134_s18 = smov %s931_s19 }
 0x1e3   : > { %p15_p3 = scmp.ge.s32.totalorder %s18_s23, 4   ;;  %s1135_s19 = smov %s935_s20 }
 0x1e4   : > { %s1136_s20 = smov %s1033_s6  ;;  %s1137_s21 = smov %s943_s22 }
 0x1e5   : > { %s1138_s22 = smov %s1140_s26  ;;  %17 = sbr.rel (!%p15_p3) target bundleno = 4 (0x4), region = 75 }
 0x1ea   :  { %649 = vsyncpa [#allocation3], 1 }
 0x1eb   :  { %651 = vsyncpa [#allocation3 + $0x1], 1 }

</bundles_post_ra>
